<compile_context>
chip_gen: v7x
topology: tpu7x:2x2x1
jax: 0.10.0
libtpu: 0.0.40
codegen_flags: <defaults>
</compile_context>

<pallas_src>
import jax
import jax.numpy as jnp
from jax import lax
from jax.experimental import pallas as pl
from jax.experimental.pallas import tpu as pltpu


# ----------------------------------------------------------------------------
# Fused kernel: encoder layers -> decoder layers (1 step, zero state) -> Linear
# ----------------------------------------------------------------------------
def _make_fused_kernel(T, Bc, I, H, C, num_layers):
    """Builds the fused kernel for static (T, Bc, I, H, C, num_layers)."""
    H3 = 3 * H
    H4 = 4 * H

    def kernel(*refs):
        it = iter(refs)
        x_ref = next(it)                                      # (T, Bc, I)  f32 (time-major)
        enc = [(next(it), next(it), next(it)) for _ in range(num_layers)]  # wih(bf16), whh(bf16), b(f32)
        dec = [(next(it), next(it)) for _ in range(num_layers)]            # wih(bf16), b(f32)
        fc_w_ref = next(it)                                   # (H, C)   bf16
        fc_b_ref = next(it)                                   # (1, C)   f32
        out_ref = next(it)                                    # (Bc, C)  f32
        seq_sc = next(it)                                     # (T, Bc, H)  f32  inter-layer sequence
        xw_sc = next(it)                                      # (T, Bc, 4H) f32  hoisted input projection

        # ---------------- encoder stack ----------------
        h_last = None
        for layer in range(num_layers):
            wih_ref, whh_ref, b_ref = enc[layer]
            if layer == 0:
                x_all = x_ref[...].reshape(T * Bc, I)
            else:
                x_all = seq_sc[...].reshape(T * Bc, H)
            # One big MXU matmul (bf16 operands, f32 accumulate) for all T steps,
            # bias folded in.  Reshapes are layout-preserving (Bc % 8 == 0).
            xw = (
                jnp.dot(x_all.astype(jnp.bfloat16), wih_ref[...],
                        preferred_element_type=jnp.float32)
                + b_ref[...]
            )
            xw_sc[...] = xw.reshape(T, Bc, H4)

            write_seq = layer < num_layers - 1  # top layer: only final h is consumed

            def body(t, carry, _write=write_seq, _whh_ref=whh_ref):
                h, c = carry
                # Read Whh from its VMEM ref inside the step (no hoisted vreg copy).
                gates = xw_sc[t] + jnp.dot(
                    h.astype(jnp.bfloat16), _whh_ref[...],
                    preferred_element_type=jnp.float32)
                # gate order [i, f, o, g] -> two contiguous nonlinearity slabs
                sig = jax.nn.sigmoid(gates[:, :H3])
                g_g = jnp.tanh(gates[:, H3:])
                i_g = sig[:, 0:H]
                f_g = sig[:, H:2 * H]
                o_g = sig[:, 2 * H:H3]
                c = f_g * c + i_g * g_g
                h = o_g * jnp.tanh(c)
                if _write:
                    seq_sc[t] = h
                return (h, c)

            h0 = jnp.zeros((Bc, H), jnp.float32)
            c0 = jnp.zeros((Bc, H), jnp.float32)
            h_last, _ = lax.fori_loop(0, T, body, (h0, c0))

        # ---------------- decoder stack (single step, zero initial state) ----
        # h_prev = 0  -> h @ Whh vanishes (Whh not shipped); c_prev = 0 -> no forget term.
        x_dec = h_last                                        # (Bc, H) = encoder_out[:, -1, :]
        for layer in range(num_layers):
            wih_ref, b_ref = dec[layer]
            gates = (
                jnp.dot(x_dec.astype(jnp.bfloat16), wih_ref[...],
                        preferred_element_type=jnp.float32)
                + b_ref[...]
            )
            i_g = jax.nn.sigmoid(gates[:, 0:H])
            o_g = jax.nn.sigmoid(gates[:, 2 * H:H3])
            g_g = jnp.tanh(gates[:, H3:])
            c_new = i_g * g_g
            x_dec = o_g * jnp.tanh(c_new)

        # ---------------- final Linear ----------------
        out_ref[...] = (
            jnp.dot(x_dec.astype(jnp.bfloat16), fc_w_ref[...],
                    preferred_element_type=jnp.float32)
            + fc_b_ref[...]
        )

    return kernel


# ----------------------------------------------------------------------------
# Weight preparation: gate reorder [i,f,g,o] -> [i,f,o,g], transpose, fold bias,
# cast matmul operands to bf16 (biases stay f32).
# ----------------------------------------------------------------------------
def _prep_lstm_weights(w_ih, w_hh, b_ih, b_hh, H, include_whh=True):
    def reorder(w):  # permute gate blocks along first axis
        return jnp.concatenate(
            [w[0:H], w[H:2 * H], w[3 * H:4 * H], w[2 * H:3 * H]], axis=0
        )

    wih_t = jnp.transpose(reorder(w_ih)).astype(jnp.bfloat16)      # (in_feat, 4H)
    bias = reorder(b_ih + b_hh).reshape(1, 4 * H).astype(jnp.float32)
    if include_whh:
        whh_t = jnp.transpose(reorder(w_hh)).astype(jnp.bfloat16)  # (H, 4H)
        return [wih_t, whh_t, bias]
    return [wih_t, bias]


# ----------------------------------------------------------------------------
# Full forward pass (matches ECGSeq2Seq.forward, eval-mode semantics)
# ----------------------------------------------------------------------------
def ecg_seq2seq_forward(x_bti, params):
    B, T, I = x_bti.shape
    H = params["encoder"][0]["w_hh"].shape[1]
    C = params["fc_w"].shape[0]
    num_layers = len(params["encoder"])

    # --- batch padding (sublane alignment) and optional 2-way batch split -----
    B_pad = max(8, ((B + 7) // 8) * 8)
    num_chunks = 2 if (B_pad >= 16 and B_pad % 16 == 0) else 1   # megacore on v7x
    Bc = B_pad // num_chunks

    # batch_first (B, T, I) -> time-major (T, B_pad, I), f32 (cast to bf16 at the MXU)
    x_tbi = jnp.transpose(x_bti, (1, 0, 2)).astype(jnp.float32)
    if B_pad != B:
        x_tbi = jnp.pad(x_tbi, ((0, 0), (0, B_pad - B), (0, 0)))

    weight_arrays = []
    for layer in params["encoder"]:
        weight_arrays += _prep_lstm_weights(
            layer["w_ih"], layer["w_hh"], layer["b_ih"], layer["b_hh"], H, True)
    for layer in params["decoder"]:
        weight_arrays += _prep_lstm_weights(
            layer["w_ih"], layer["w_hh"], layer["b_ih"], layer["b_hh"], H, False)
    fc_w_t = jnp.transpose(params["fc_w"]).astype(jnp.bfloat16)    # (H, C)
    fc_b = params["fc_b"].reshape(1, C).astype(jnp.float32)

    in_arrays = [x_tbi] + weight_arrays + [fc_w_t, fc_b]

    def stationary(shape):
        nd = len(shape)
        return pl.BlockSpec(shape, lambda i, _nd=nd: (0,) * _nd)

    in_specs = [pl.BlockSpec((T, Bc, I), lambda i: (0, i, 0))]
    in_specs += [stationary(a.shape) for a in weight_arrays]
    in_specs += [stationary(fc_w_t.shape), stationary(fc_b.shape)]
    out_spec = pl.BlockSpec((Bc, C), lambda i: (i, 0))

    scratch_shapes = [
        pltpu.VMEM((T, Bc, H), jnp.float32),        # inter-layer sequence
        pltpu.VMEM((T, Bc, 4 * H), jnp.float32),    # hoisted input projection
    ]

    # --- explicit VMEM budget: double-buffered inputs/output + scratch + headroom ---
    input_bytes = sum(int(a.size) * a.dtype.itemsize for a in in_arrays)
    out_bytes = B_pad * C * 4
    scratch_bytes = (T * Bc * H + T * Bc * 4 * H) * 4
    vmem_needed = 2 * (input_bytes + out_bytes) + 3 * scratch_bytes + (8 << 20)
    vmem_limit_bytes = int(min(max(vmem_needed, 32 << 20), 64 << 20))

    kernel = _make_fused_kernel(T, Bc, I, H, C, num_layers)

    out_padded = pl.pallas_call(
        kernel,
        out_shape=jax.ShapeDtypeStruct((B_pad, C), jnp.float32),
        grid_spec=pltpu.PrefetchScalarGridSpec(
            num_scalar_prefetch=0,
            grid=(num_chunks,),
            in_specs=in_specs,
            out_specs=out_spec,
            scratch_shapes=scratch_shapes,
        ),
        compiler_params=pltpu.CompilerParams(
            dimension_semantics=("parallel",),
            vmem_limit_bytes=vmem_limit_bytes,
        ),
    )(*in_arrays)

    return out_padded[:B]


# ----------------------------------------------------------------------------
# Pure-JAX f32 reference (PyTorch eval-mode semantics) for correctness check
# ----------------------------------------------------------------------------
def _reference_forward(x_bti, params):
    B, T, _ = x_bti.shape
    H = params["encoder"][0]["w_hh"].shape[1]

    def lstm_step(x, h, c, w_ih, w_hh, b_ih, b_hh):
        gates = x @ w_ih.T + b_ih + h @ w_hh.T + b_hh
        i = jax.nn.sigmoid(gates[:, 0:H])
        f = jax.nn.sigmoid(gates[:, H:2 * H])
        g = jnp.tanh(gates[:, 2 * H:3 * H])
        o = jax.nn.sigmoid(gates[:, 3 * H:4 * H])
        c = f * c + i * g
        h = o * jnp.tanh(c)
        return h, c

    seq = x_bti.astype(jnp.float32)
    for layer in params["encoder"]:
        h = jnp.zeros((B, H), jnp.float32)
        c = jnp.zeros((B, H), jnp.float32)
        outs = []
        for t in range(T):
            h, c = lstm_step(seq[:, t], h, c, layer["w_ih"], layer["w_hh"],
                             layer["b_ih"], layer["b_hh"])
            outs.append(h)
        seq = jnp.stack(outs, axis=1)
    x_dec = seq[:, -1]
    for layer in params["decoder"]:
        h = jnp.zeros((B, H), jnp.float32)
        c = jnp.zeros((B, H), jnp.float32)
        x_dec, _ = lstm_step(x_dec, h, c, layer["w_ih"], layer["w_hh"],
                             layer["b_ih"], layer["b_hh"])
    return x_dec @ params["fc_w"].T + params["fc_b"]


# ----------------------------------------------------------------------------
# Parameter init (deterministic, PyTorch-style U(-1/sqrt(H), 1/sqrt(H)))
# ----------------------------------------------------------------------------
def init_params(key, input_size, hidden_size, num_layers, num_classes):
    k = 1.0 / jnp.sqrt(jnp.float32(hidden_size))

    def uni(key, shape):
        return jax.random.uniform(key, shape, jnp.float32, -k, k)

    params = {"encoder": [], "decoder": []}
    for name, in0 in (("encoder", input_size), ("decoder", hidden_size)):
        for layer in range(num_layers):
            in_feat = in0 if layer == 0 else hidden_size
            key, k1, k2, k3, k4 = jax.random.split(key, 5)
            params[name].append(
                dict(
                    w_ih=uni(k1, (4 * hidden_size, in_feat)),
                    w_hh=uni(k2, (4 * hidden_size, hidden_size)),
                    b_ih=uni(k3, (4 * hidden_size,)),
                    b_hh=uni(k4, (4 * hidden_size,)),
                )
            )
    key, k1, k2 = jax.random.split(key, 3)
    params["fc_w"] = uni(k1, (num_classes, hidden_size))
    params["fc_b"] = uni(k2, (num_classes,))
    return params


if __name__ == "__main__":
    B, T = 2, 8
    input_size, hidden_size, num_layers, num_classes = 4, 32, 2, 5

    key = jax.random.PRNGKey(0)
    key, kx = jax.random.split(key)
    x = jax.random.normal(kx, (B, T, input_size), jnp.float32)   # batch_first (B, T, I)

    params = init_params(key, input_size, hidden_size, num_layers, num_classes)

    out = jax.jit(ecg_seq2seq_forward)(x, params)                # (B, num_classes)
    jax.block_until_ready(out)
    assert out.shape == (B, num_classes)

    ref = _reference_forward(x, params)
    max_err = float(jnp.max(jnp.abs(out - ref)))
    assert max_err < 5e-2, f"max abs error vs f32 reference: {max_err}"
    print("KERNEL_OK")
</pallas_src>

<mosaic_0001>
module attributes {stable_mosaic.version = 11 : i64} {
  func.func @kernel(%arg0: i32, %arg1: memref<8x8x4xf32, #tpu.memory_space<vmem>>, %arg2: memref<4x128xbf16, #tpu.memory_space<vmem>>, %arg3: memref<32x128xbf16, #tpu.memory_space<vmem>>, %arg4: memref<1x128xf32, #tpu.memory_space<vmem>>, %arg5: memref<32x128xbf16, #tpu.memory_space<vmem>>, %arg6: memref<32x128xbf16, #tpu.memory_space<vmem>>, %arg7: memref<1x128xf32, #tpu.memory_space<vmem>>, %arg8: memref<32x128xbf16, #tpu.memory_space<vmem>>, %arg9: memref<1x128xf32, #tpu.memory_space<vmem>>, %arg10: memref<32x128xbf16, #tpu.memory_space<vmem>>, %arg11: memref<1x128xf32, #tpu.memory_space<vmem>>, %arg12: memref<32x5xbf16, #tpu.memory_space<vmem>>, %arg13: memref<1x5xf32, #tpu.memory_space<vmem>>, %arg14: memref<8x5xf32, #tpu.memory_space<vmem>>, %arg15: memref<8x8x32xf32, #tpu.memory_space<vmem>>, %arg16: memref<8x8x128xf32, #tpu.memory_space<vmem>>) attributes {dimension_semantics = [#tpu.dimension_semantics<parallel>], iteration_bounds = array<i64: 1>, scalar_prefetch = 0 : i64, scratch_operands = 2 : i64, tpu.core_type = #tpu.core_type<tc>, window_params = [{transform_indices = @transform_0, window_bounds = array<i64: 8, 8, 4>}, {pipeline_mode = #tpu.pipeline_mode<synchronous>, transform_indices = @transform_1, window_bounds = array<i64: 4, 128>}, {pipeline_mode = #tpu.pipeline_mode<synchronous>, transform_indices = @transform_2, window_bounds = array<i64: 32, 128>}, {pipeline_mode = #tpu.pipeline_mode<synchronous>, transform_indices = @transform_3, window_bounds = array<i64: 1, 128>}, {pipeline_mode = #tpu.pipeline_mode<synchronous>, transform_indices = @transform_4, window_bounds = array<i64: 32, 128>}, {pipeline_mode = #tpu.pipeline_mode<synchronous>, transform_indices = @transform_5, window_bounds = array<i64: 32, 128>}, {pipeline_mode = #tpu.pipeline_mode<synchronous>, transform_indices = @transform_6, window_bounds = array<i64: 1, 128>}, {pipeline_mode = #tpu.pipeline_mode<synchronous>, transform_indices = @transform_7, window_bounds = array<i64: 32, 128>}, {pipeline_mode = #tpu.pipeline_mode<synchronous>, transform_indices = @transform_8, window_bounds = array<i64: 1, 128>}, {pipeline_mode = #tpu.pipeline_mode<synchronous>, transform_indices = @transform_9, window_bounds = array<i64: 32, 128>}, {pipeline_mode = #tpu.pipeline_mode<synchronous>, transform_indices = @transform_10, window_bounds = array<i64: 1, 128>}, {pipeline_mode = #tpu.pipeline_mode<synchronous>, transform_indices = @transform_11, window_bounds = array<i64: 32, 5>}, {pipeline_mode = #tpu.pipeline_mode<synchronous>, transform_indices = @transform_12, window_bounds = array<i64: 1, 5>}, {transform_indices = @transform_13, window_bounds = array<i64: 8, 5>}]} {
    %c0 = arith.constant 0 : index
    %c0_0 = arith.constant 0 : index
    %c0_1 = arith.constant 0 : index
    %0 = vector.load %arg1[%c0, %c0_0, %c0_1] : memref<8x8x4xf32, #tpu.memory_space<vmem>>, vector<8x8x4xf32>
    %1 = vector.shape_cast %0 : vector<8x8x4xf32> to vector<64x4xf32>
    %2 = arith.truncf %1 : vector<64x4xf32> to vector<64x4xbf16>
    %c0_2 = arith.constant 0 : index
    %c0_3 = arith.constant 0 : index
    %3 = vector.load %arg2[%c0_2, %c0_3] : memref<4x128xbf16, #tpu.memory_space<vmem>>, vector<4x128xbf16>
    %cst = arith.constant dense<0.000000e+00> : vector<64x128xf32>
    %4 = tpu.matmul %2, %3, %cst {dimension_numbers = #tpu.dot_dimension_numbers<[1], [0], [0], [1], [0, 0, 1, 1], [], []>} : vector<64x4xbf16>, vector<4x128xbf16>, vector<64x128xf32> -> vector<64x128xf32>
    %c0_4 = arith.constant 0 : index
    %c0_5 = arith.constant 0 : index
    %5 = vector.load %arg4[%c0_4, %c0_5] : memref<1x128xf32, #tpu.memory_space<vmem>>, vector<1x128xf32>
    %6 = vector.broadcast %5 : vector<1x128xf32> to vector<64x128xf32>
    %7 = arith.addf %4, %6 : vector<64x128xf32>
    %8 = vector.shape_cast %7 : vector<64x128xf32> to vector<8x8x128xf32>
    %c0_6 = arith.constant 0 : index
    %c0_7 = arith.constant 0 : index
    %c0_8 = arith.constant 0 : index
    %9 = vector.load %arg16[%c0_6, %c0_7, %c0_8] : memref<8x8x128xf32, #tpu.memory_space<vmem>>, vector<8x8x128xf32>
    tpu.vector_store %arg16[%c0_6, %c0_7, %c0_8], %8 {strides = array<i32>} : memref<8x8x128xf32, #tpu.memory_space<vmem>>, vector<8x8x128xf32>,
    %cst_9 = arith.constant 0.000000e+00 : f32
    %10 = vector.broadcast %cst_9 : f32 to vector<8x32xf32>
    %cst_10 = arith.constant 0.000000e+00 : f32
    %11 = vector.broadcast %cst_10 : f32 to vector<8x32xf32>
    %c0_i32 = arith.constant 0 : i32
    %c8_i32 = arith.constant 8 : i32
    %12 = arith.addi %c0_i32, %c8_i32 : i32
    %c1_i32 = arith.constant 1 : i32
    %13:2 = scf.for %arg17 = %c0_i32 to %12 step %c1_i32 iter_args(%arg18 = %10, %arg19 = %11) -> (vector<8x32xf32>, vector<8x32xf32>)  : i32 {
      %81 = arith.index_cast %arg17 : i32 to index
      %c0_50 = arith.constant 0 : index
      %c0_51 = arith.constant 0 : index
      %82 = vector.load %arg16[%81, %c0_50, %c0_51] : memref<8x8x128xf32, #tpu.memory_space<vmem>>, vector<1x8x128xf32>
      %83 = vector.shape_cast %82 : vector<1x8x128xf32> to vector<8x128xf32>
      %84 = arith.truncf %arg18 : vector<8x32xf32> to vector<8x32xbf16>
      %c0_52 = arith.constant 0 : index
      %c0_53 = arith.constant 0 : index
      %85 = vector.load %arg3[%c0_52, %c0_53] : memref<32x128xbf16, #tpu.memory_space<vmem>>, vector<32x128xbf16>
      %cst_54 = arith.constant dense<0.000000e+00> : vector<8x128xf32>
      %86 = tpu.matmul %84, %85, %cst_54 {dimension_numbers = #tpu.dot_dimension_numbers<[1], [0], [0], [1], [0, 0, 1, 1], [], []>} : vector<8x32xbf16>, vector<32x128xbf16>, vector<8x128xf32> -> vector<8x128xf32>
      %87 = arith.addf %83, %86 : vector<8x128xf32>
      %88 = vector.extract_strided_slice %87 {offsets = [0, 0], sizes = [8, 96], strides = [1, 1]} : vector<8x128xf32> to vector<8x96xf32>
      %89 = arith.negf %88 : vector<8x96xf32>
      %90 = math.exp %89 : vector<8x96xf32>
      %cst_55 = arith.constant 1.000000e+00 : f32
      %91 = vector.broadcast %cst_55 : f32 to vector<8x96xf32>
      %92 = arith.addf %91, %90 : vector<8x96xf32>
      %93 = arith.divf %91, %92 : vector<8x96xf32>
      %94 = vector.extract_strided_slice %87 {offsets = [0, 96], sizes = [8, 32], strides = [1, 1]} : vector<8x128xf32> to vector<8x32xf32>
      %95 = math.tanh %94 : vector<8x32xf32>
      %96 = vector.extract_strided_slice %93 {offsets = [0, 0], sizes = [8, 32], strides = [1, 1]} : vector<8x96xf32> to vector<8x32xf32>
      %97 = vector.extract_strided_slice %93 {offsets = [0, 32], sizes = [8, 32], strides = [1, 1]} : vector<8x96xf32> to vector<8x32xf32>
      %98 = vector.extract_strided_slice %93 {offsets = [0, 64], sizes = [8, 32], strides = [1, 1]} : vector<8x96xf32> to vector<8x32xf32>
      %99 = arith.mulf %97, %arg19 : vector<8x32xf32>
      %100 = arith.mulf %96, %95 : vector<8x32xf32>
      %101 = arith.addf %99, %100 : vector<8x32xf32>
      %102 = math.tanh %101 : vector<8x32xf32>
      %103 = arith.mulf %98, %102 : vector<8x32xf32>
      %104 = arith.index_cast %arg17 : i32 to index
      %c0_56 = arith.constant 0 : index
      %c0_57 = arith.constant 0 : index
      %105 = vector.load %arg15[%104, %c0_56, %c0_57] : memref<8x8x32xf32, #tpu.memory_space<vmem>>, vector<1x8x32xf32>
      %106 = vector.shape_cast %105 : vector<1x8x32xf32> to vector<8x32xf32>
      %107 = vector.shape_cast %103 : vector<8x32xf32> to vector<1x8x32xf32>
      tpu.vector_store %arg15[%104, %c0_56, %c0_57], %107 {strides = array<i32>} : memref<8x8x32xf32, #tpu.memory_space<vmem>>, vector<1x8x32xf32>,
      scf.yield %103, %101 : vector<8x32xf32>, vector<8x32xf32>
    }
    %c8_i32_11 = arith.constant 8 : i32
    %c0_12 = arith.constant 0 : index
    %c0_13 = arith.constant 0 : index
    %c0_14 = arith.constant 0 : index
    %14 = vector.load %arg15[%c0_12, %c0_13, %c0_14] : memref<8x8x32xf32, #tpu.memory_space<vmem>>, vector<8x8x32xf32>
    %15 = vector.shape_cast %14 : vector<8x8x32xf32> to vector<64x32xf32>
    %16 = arith.truncf %15 : vector<64x32xf32> to vector<64x32xbf16>
    %c0_15 = arith.constant 0 : index
    %c0_16 = arith.constant 0 : index
    %17 = vector.load %arg5[%c0_15, %c0_16] : memref<32x128xbf16, #tpu.memory_space<vmem>>, vector<32x128xbf16>
    %cst_17 = arith.constant dense<0.000000e+00> : vector<64x128xf32>
    %18 = tpu.matmul %16, %17, %cst_17 {dimension_numbers = #tpu.dot_dimension_numbers<[1], [0], [0], [1], [0, 0, 1, 1], [], []>} : vector<64x32xbf16>, vector<32x128xbf16>, vector<64x128xf32> -> vector<64x128xf32>
    %c0_18 = arith.constant 0 : index
    %c0_19 = arith.constant 0 : index
    %19 = vector.load %arg7[%c0_18, %c0_19] : memref<1x128xf32, #tpu.memory_space<vmem>>, vector<1x128xf32>
    %20 = vector.broadcast %19 : vector<1x128xf32> to vector<64x128xf32>
    %21 = arith.addf %18, %20 : vector<64x128xf32>
    %22 = vector.shape_cast %21 : vector<64x128xf32> to vector<8x8x128xf32>
    %c0_20 = arith.constant 0 : index
    %c0_21 = arith.constant 0 : index
    %c0_22 = arith.constant 0 : index
    %23 = vector.load %arg16[%c0_20, %c0_21, %c0_22] : memref<8x8x128xf32, #tpu.memory_space<vmem>>, vector<8x8x128xf32>
    tpu.vector_store %arg16[%c0_20, %c0_21, %c0_22], %22 {strides = array<i32>} : memref<8x8x128xf32, #tpu.memory_space<vmem>>, vector<8x8x128xf32>,
    %cst_23 = arith.constant 0.000000e+00 : f32
    %24 = vector.broadcast %cst_23 : f32 to vector<8x32xf32>
    %cst_24 = arith.constant 0.000000e+00 : f32
    %25 = vector.broadcast %cst_24 : f32 to vector<8x32xf32>
    %c0_i32_25 = arith.constant 0 : i32
    %c8_i32_26 = arith.constant 8 : i32
    %26 = arith.addi %c0_i32_25, %c8_i32_26 : i32
    %c1_i32_27 = arith.constant 1 : i32
    %27:2 = scf.for %arg17 = %c0_i32_25 to %26 step %c1_i32_27 iter_args(%arg18 = %24, %arg19 = %25) -> (vector<8x32xf32>, vector<8x32xf32>)  : i32 {
      %81 = arith.index_cast %arg17 : i32 to index
      %c0_50 = arith.constant 0 : index
      %c0_51 = arith.constant 0 : index
      %82 = vector.load %arg16[%81, %c0_50, %c0_51] : memref<8x8x128xf32, #tpu.memory_space<vmem>>, vector<1x8x128xf32>
      %83 = vector.shape_cast %82 : vector<1x8x128xf32> to vector<8x128xf32>
      %84 = arith.truncf %arg18 : vector<8x32xf32> to vector<8x32xbf16>
      %c0_52 = arith.constant 0 : index
      %c0_53 = arith.constant 0 : index
      %85 = vector.load %arg6[%c0_52, %c0_53] : memref<32x128xbf16, #tpu.memory_space<vmem>>, vector<32x128xbf16>
      %cst_54 = arith.constant dense<0.000000e+00> : vector<8x128xf32>
      %86 = tpu.matmul %84, %85, %cst_54 {dimension_numbers = #tpu.dot_dimension_numbers<[1], [0], [0], [1], [0, 0, 1, 1], [], []>} : vector<8x32xbf16>, vector<32x128xbf16>, vector<8x128xf32> -> vector<8x128xf32>
      %87 = arith.addf %83, %86 : vector<8x128xf32>
      %88 = vector.extract_strided_slice %87 {offsets = [0, 0], sizes = [8, 96], strides = [1, 1]} : vector<8x128xf32> to vector<8x96xf32>
      %89 = arith.negf %88 : vector<8x96xf32>
      %90 = math.exp %89 : vector<8x96xf32>
      %cst_55 = arith.constant 1.000000e+00 : f32
      %91 = vector.broadcast %cst_55 : f32 to vector<8x96xf32>
      %92 = arith.addf %91, %90 : vector<8x96xf32>
      %93 = arith.divf %91, %92 : vector<8x96xf32>
      %94 = vector.extract_strided_slice %87 {offsets = [0, 96], sizes = [8, 32], strides = [1, 1]} : vector<8x128xf32> to vector<8x32xf32>
      %95 = math.tanh %94 : vector<8x32xf32>
      %96 = vector.extract_strided_slice %93 {offsets = [0, 0], sizes = [8, 32], strides = [1, 1]} : vector<8x96xf32> to vector<8x32xf32>
      %97 = vector.extract_strided_slice %93 {offsets = [0, 32], sizes = [8, 32], strides = [1, 1]} : vector<8x96xf32> to vector<8x32xf32>
      %98 = vector.extract_strided_slice %93 {offsets = [0, 64], sizes = [8, 32], strides = [1, 1]} : vector<8x96xf32> to vector<8x32xf32>
      %99 = arith.mulf %97, %arg19 : vector<8x32xf32>
      %100 = arith.mulf %96, %95 : vector<8x32xf32>
      %101 = arith.addf %99, %100 : vector<8x32xf32>
      %102 = math.tanh %101 : vector<8x32xf32>
      %103 = arith.mulf %98, %102 : vector<8x32xf32>
      scf.yield %103, %101 : vector<8x32xf32>, vector<8x32xf32>
    }
    %c8_i32_28 = arith.constant 8 : i32
    %28 = arith.truncf %27#0 : vector<8x32xf32> to vector<8x32xbf16>
    %c0_29 = arith.constant 0 : index
    %c0_30 = arith.constant 0 : index
    %29 = vector.load %arg8[%c0_29, %c0_30] : memref<32x128xbf16, #tpu.memory_space<vmem>>, vector<32x128xbf16>
    %cst_31 = arith.constant dense<0.000000e+00> : vector<8x128xf32>
    %30 = tpu.matmul %28, %29, %cst_31 {dimension_numbers = #tpu.dot_dimension_numbers<[1], [0], [0], [1], [0, 0, 1, 1], [], []>} : vector<8x32xbf16>, vector<32x128xbf16>, vector<8x128xf32> -> vector<8x128xf32>
    %c0_32 = arith.constant 0 : index
    %c0_33 = arith.constant 0 : index
    %31 = vector.load %arg9[%c0_32, %c0_33] : memref<1x128xf32, #tpu.memory_space<vmem>>, vector<1x128xf32>
    %32 = vector.broadcast %31 : vector<1x128xf32> to vector<8x128xf32>
    %33 = arith.addf %30, %32 : vector<8x128xf32>
    %34 = vector.extract_strided_slice %33 {offsets = [0, 0], sizes = [8, 32], strides = [1, 1]} : vector<8x128xf32> to vector<8x32xf32>
    %35 = arith.negf %34 : vector<8x32xf32>
    %36 = math.exp %35 : vector<8x32xf32>
    %cst_34 = arith.constant 1.000000e+00 : f32
    %37 = vector.broadcast %cst_34 : f32 to vector<8x32xf32>
    %38 = arith.addf %37, %36 : vector<8x32xf32>
    %39 = arith.divf %37, %38 : vector<8x32xf32>
    %40 = vector.extract_strided_slice %33 {offsets = [0, 64], sizes = [8, 32], strides = [1, 1]} : vector<8x128xf32> to vector<8x32xf32>
    %41 = arith.negf %40 : vector<8x32xf32>
    %42 = math.exp %41 : vector<8x32xf32>
    %cst_35 = arith.constant 1.000000e+00 : f32
    %43 = vector.broadcast %cst_35 : f32 to vector<8x32xf32>
    %44 = arith.addf %43, %42 : vector<8x32xf32>
    %45 = arith.divf %43, %44 : vector<8x32xf32>
    %46 = vector.extract_strided_slice %33 {offsets = [0, 96], sizes = [8, 32], strides = [1, 1]} : vector<8x128xf32> to vector<8x32xf32>
    %47 = math.tanh %46 : vector<8x32xf32>
    %48 = arith.mulf %39, %47 : vector<8x32xf32>
    %49 = math.tanh %48 : vector<8x32xf32>
    %50 = arith.mulf %45, %49 : vector<8x32xf32>
    %51 = arith.truncf %50 : vector<8x32xf32> to vector<8x32xbf16>
    %c0_36 = arith.constant 0 : index
    %c0_37 = arith.constant 0 : index
    %52 = vector.load %arg10[%c0_36, %c0_37] : memref<32x128xbf16, #tpu.memory_space<vmem>>, vector<32x128xbf16>
    %cst_38 = arith.constant dense<0.000000e+00> : vector<8x128xf32>
    %53 = tpu.matmul %51, %52, %cst_38 {dimension_numbers = #tpu.dot_dimension_numbers<[1], [0], [0], [1], [0, 0, 1, 1], [], []>} : vector<8x32xbf16>, vector<32x128xbf16>, vector<8x128xf32> -> vector<8x128xf32>
    %c0_39 = arith.constant 0 : index
    %c0_40 = arith.constant 0 : index
    %54 = vector.load %arg11[%c0_39, %c0_40] : memref<1x128xf32, #tpu.memory_space<vmem>>, vector<1x128xf32>
    %55 = vector.broadcast %54 : vector<1x128xf32> to vector<8x128xf32>
    %56 = arith.addf %53, %55 : vector<8x128xf32>
    %57 = vector.extract_strided_slice %56 {offsets = [0, 0], sizes = [8, 32], strides = [1, 1]} : vector<8x128xf32> to vector<8x32xf32>
    %58 = arith.negf %57 : vector<8x32xf32>
    %59 = math.exp %58 : vector<8x32xf32>
    %cst_41 = arith.constant 1.000000e+00 : f32
    %60 = vector.broadcast %cst_41 : f32 to vector<8x32xf32>
    %61 = arith.addf %60, %59 : vector<8x32xf32>
    %62 = arith.divf %60, %61 : vector<8x32xf32>
    %63 = vector.extract_strided_slice %56 {offsets = [0, 64], sizes = [8, 32], strides = [1, 1]} : vector<8x128xf32> to vector<8x32xf32>
    %64 = arith.negf %63 : vector<8x32xf32>
    %65 = math.exp %64 : vector<8x32xf32>
    %cst_42 = arith.constant 1.000000e+00 : f32
    %66 = vector.broadcast %cst_42 : f32 to vector<8x32xf32>
    %67 = arith.addf %66, %65 : vector<8x32xf32>
    %68 = arith.divf %66, %67 : vector<8x32xf32>
    %69 = vector.extract_strided_slice %56 {offsets = [0, 96], sizes = [8, 32], strides = [1, 1]} : vector<8x128xf32> to vector<8x32xf32>
    %70 = math.tanh %69 : vector<8x32xf32>
    %71 = arith.mulf %62, %70 : vector<8x32xf32>
    %72 = math.tanh %71 : vector<8x32xf32>
    %73 = arith.mulf %68, %72 : vector<8x32xf32>
    %74 = arith.truncf %73 : vector<8x32xf32> to vector<8x32xbf16>
    %c0_43 = arith.constant 0 : index
    %c0_44 = arith.constant 0 : index
    %75 = vector.load %arg12[%c0_43, %c0_44] : memref<32x5xbf16, #tpu.memory_space<vmem>>, vector<32x5xbf16>
    %cst_45 = arith.constant dense<0.000000e+00> : vector<8x5xf32>
    %76 = tpu.matmul %74, %75, %cst_45 {dimension_numbers = #tpu.dot_dimension_numbers<[1], [0], [0], [1], [0, 0, 1, 1], [], []>} : vector<8x32xbf16>, vector<32x5xbf16>, vector<8x5xf32> -> vector<8x5xf32>
    %c0_46 = arith.constant 0 : index
    %c0_47 = arith.constant 0 : index
    %77 = vector.load %arg13[%c0_46, %c0_47] : memref<1x5xf32, #tpu.memory_space<vmem>>, vector<1x5xf32>
    %78 = vector.broadcast %77 : vector<1x5xf32> to vector<8x5xf32>
    %79 = arith.addf %76, %78 : vector<8x5xf32>
    %c0_48 = arith.constant 0 : index
    %c0_49 = arith.constant 0 : index
    %80 = vector.load %arg14[%c0_48, %c0_49] : memref<8x5xf32, #tpu.memory_space<vmem>>, vector<8x5xf32>
    tpu.vector_store %arg14[%c0_48, %c0_49], %79 {strides = array<i32>} : memref<8x5xf32, #tpu.memory_space<vmem>>, vector<8x5xf32>,
    return
  }
  func.func @transform_0(%arg0: i32) -> (i32, i32, i32) {
    %c0_i32 = arith.constant 0 : i32
    %c0_i32_0 = arith.constant 0 : i32
    %c0_i32_1 = arith.constant 0 : i32
    return %c0_i32, %arg0, %c0_i32_0 : i32, i32, i32
  }
  func.func @transform_1(%arg0: i32) -> (i32, i32) {
    %c0_i32 = arith.constant 0 : i32
    %c0_i32_0 = arith.constant 0 : i32
    %c0_i32_1 = arith.constant 0 : i32
    return %c0_i32, %c0_i32_0 : i32, i32
  }
  func.func @transform_2(%arg0: i32) -> (i32, i32) {
    %c0_i32 = arith.constant 0 : i32
    %c0_i32_0 = arith.constant 0 : i32
    %c0_i32_1 = arith.constant 0 : i32
    return %c0_i32, %c0_i32_0 : i32, i32
  }
  func.func @transform_3(%arg0: i32) -> (i32, i32) {
    %c0_i32 = arith.constant 0 : i32
    %c0_i32_0 = arith.constant 0 : i32
    %c0_i32_1 = arith.constant 0 : i32
    return %c0_i32, %c0_i32_0 : i32, i32
  }
  func.func @transform_4(%arg0: i32) -> (i32, i32) {
    %c0_i32 = arith.constant 0 : i32
    %c0_i32_0 = arith.constant 0 : i32
    %c0_i32_1 = arith.constant 0 : i32
    return %c0_i32, %c0_i32_0 : i32, i32
  }
  func.func @transform_5(%arg0: i32) -> (i32, i32) {
    %c0_i32 = arith.constant 0 : i32
    %c0_i32_0 = arith.constant 0 : i32
    %c0_i32_1 = arith.constant 0 : i32
    return %c0_i32, %c0_i32_0 : i32, i32
  }
  func.func @transform_6(%arg0: i32) -> (i32, i32) {
    %c0_i32 = arith.constant 0 : i32
    %c0_i32_0 = arith.constant 0 : i32
    %c0_i32_1 = arith.constant 0 : i32
    return %c0_i32, %c0_i32_0 : i32, i32
  }
  func.func @transform_7(%arg0: i32) -> (i32, i32) {
    %c0_i32 = arith.constant 0 : i32
    %c0_i32_0 = arith.constant 0 : i32
    %c0_i32_1 = arith.constant 0 : i32
    return %c0_i32, %c0_i32_0 : i32, i32
  }
  func.func @transform_8(%arg0: i32) -> (i32, i32) {
    %c0_i32 = arith.constant 0 : i32
    %c0_i32_0 = arith.constant 0 : i32
    %c0_i32_1 = arith.constant 0 : i32
    return %c0_i32, %c0_i32_0 : i32, i32
  }
  func.func @transform_9(%arg0: i32) -> (i32, i32) {
    %c0_i32 = arith.constant 0 : i32
    %c0_i32_0 = arith.constant 0 : i32
    %c0_i32_1 = arith.constant 0 : i32
    return %c0_i32, %c0_i32_0 : i32, i32
  }
  func.func @transform_10(%arg0: i32) -> (i32, i32) {
    %c0_i32 = arith.constant 0 : i32
    %c0_i32_0 = arith.constant 0 : i32
    %c0_i32_1 = arith.constant 0 : i32
    return %c0_i32, %c0_i32_0 : i32, i32
  }
  func.func @transform_11(%arg0: i32) -> (i32, i32) {
    %c0_i32 = arith.constant 0 : i32
    %c0_i32_0 = arith.constant 0 : i32
    %c0_i32_1 = arith.constant 0 : i32
    return %c0_i32, %c0_i32_0 : i32, i32
  }
  func.func @transform_12(%arg0: i32) -> (i32, i32) {
    %c0_i32 = arith.constant 0 : i32
    %c0_i32_0 = arith.constant 0 : i32
    %c0_i32_1 = arith.constant 0 : i32
    return %c0_i32, %c0_i32_0 : i32, i32
  }
  func.func @transform_13(%arg0: i32) -> (i32, i32) {
    %c0_i32 = arith.constant 0 : i32
    %c0_i32_0 = arith.constant 0 : i32
    return %arg0, %c0_i32 : i32, i32
  }
}

</mosaic_0001>

<bundles_post_ra>
// kernel: ecg_seq2seq_forward.1
= control target key start
LH: loop header
LB: loop body
LE: loop exit
PB: predicated region body
PF: predicated region fallthrough
CT: control target
= control target key end

     0   :  { %vm78_vm0 = vcmask 1041408   ;;  %vm65_vm1 = vcmask 31744   ;;  %v1021_v31 = vmov 0.0   ;;  %v1025_v32 = vmov 0.0   ;;  %s1262_s1 = inlined_call_operand.vmem [shape: bf16[4,128], index: 1, kind: input, shape index: {}]   ;;  %s1263_s2 = inlined_call_operand.vmem [shape: bf16[32,128], index: 2, kind: input, shape index: {}]   ;;  %s1264_s4 = inlined_call_operand.vmem [shape: bf16[32,128], index: 4, kind: input, shape index: {}]   ;;  %s1265_s5 = inlined_call_operand.vmem [shape: bf16[32,128], index: 5, kind: input, shape index: {}]   ;;  %s1266_s6 = inlined_call_operand.vmem [shape: f32[1,128], index: 6, kind: input, shape index: {}]   ;;  %s1267_s7 = inlined_call_operand.vmem [shape: bf16[32,128], index: 7, kind: input, shape index: {}]   ;;  %s1268_s8 = inlined_call_operand.vmem [shape: f32[1,128], index: 8, kind: input, shape index: {}]   ;;  %s1269_s9 = inlined_call_operand.vmem [shape: bf16[32,128], index: 9, kind: input, shape index: {}]   ;;  %s1270_s10 = inlined_call_operand.vmem [shape: f32[1,128], index: 10, kind: input, shape index: {}]   ;;  %s1271_s11 = inlined_call_operand.vmem [shape: bf16[32,5], index: 11, kind: input, shape index: {}]   ;;  %s1272_s12 = inlined_call_operand.vmem [shape: f32[1,5], index: 12, kind: input, shape index: {}]   ;;  %s1273_s13 = inlined_call_operand.vmem [shape: f32[8,5], index: 13, kind: output, shape index: {}]   ;;  %s1274_s0 = inlined_call_operand.vmem [shape: f32[8,8,4], index: 0, kind: input, shape index: {}]   ;;  %s1275_s3 = inlined_call_operand.vmem [shape: f32[1,128], index: 3, kind: input, shape index: {}]  }
   0x1   :  { %v57_v0 = vld [vmem:[%s1262_s1] sm:$0x3]  ;;  %v46_v2 = vld [vmem:[%s1274_s0 + $0x8] sm:$0xff]  ;;  %v47_v7 = vld [vmem:[%s1274_s0 + $0x10] sm:$0xff] }
   0x2   :  { %v45_v1 = vld [vmem:[%s1274_s0] sm:$0xff]  ;;  %891 = vmatprep.subr.msk.bf16.mxu0 %vm78_vm0, %v57_v0  ;;  %892 = vmatprep.subr.msk.bf16.mxu1 %vm78_vm0, %v57_v0  ;;  %v80_v3 = vsel %vm78_vm0, %v57_v0, 0  ;;  %v50_v6 = vld [vmem:[%s1274_s0 + $0x28] sm:$0xff]  ;;  %v48_v9 = vld [vmem:[%s1274_s0 + $0x18] sm:$0xff] }
   0x3   :  { %v53_v4 = vpack.c.bf16 %v46_v2, %v45_v1  ;;  %v49_v5 = vld [vmem:[%s1274_s0 + $0x20] sm:$0xff]  ;;  %824 = vmatpush3.bf16.msra.mxu0 %v80_v3  ;;  %886 = vmatpush3.bf16.msra.mxu1 %v80_v3  ;;  %v51_v10 = vld [vmem:[%s1274_s0 + $0x30] sm:$0xff]  ;;  %v52_v11 = vld [vmem:[%s1274_s0 + $0x38] sm:$0xff]  ;;  %v54_v12 = vpack.c.bf16 %v48_v9, %v47_v7  ;;  %s1161_s0 = smov 0  }
   0x4   :  { %v55_v8 = vpack.c.bf16 %v50_v6, %v49_v5  ;;  %v56_v13 = vpack.c.bf16 %v52_v11, %v51_v10  ;;  %v761_v14 = vld [vmem:[%s1275_s3] ss:$0 sm:$0xff] }
   0x5   :  { %825 = vmatprep.mubr.msk.bf16.mxu0 %vm65_vm1, %v53_v4 }
   0x6   :  { %829 = vmatprep.mubr.msk.bf16.mxu1 %vm65_vm1, %v55_v8  ;;  %826 = vmatmul.mubr.msk.bf16.vlgmr.msra.gmra.mrb[0].mxu0 %vm65_vm1, %v54_v12 }
   0x7   :  { %830 = vmatmul.mubr.msk.bf16.vlgmr.msra.gmra.mrb[0].mxu1 %vm65_vm1, %v56_v13 }
  0xd9   :  { %v827_v15 = vpop.f32.mrb[0].mxu0 }
  0xda   :  { %v831_v16 = vpop.f32.mrb[0].mxu1  ;;  %v125_v17 = vadd.f32 %v827_v15, %v761_v14  ;;  %v116_v19 = vpop.f32.mrb[1].mxu0 }
  0xdb   :  { %v141_v18 = vadd.f32 %v831_v16, %v761_v14  ;;  %v132_v20 = vpop.f32.mrb[1].mxu1  ;;  %v117_v21 = vadd.f32 %v761_v14, %v116_v19  ;;  %v828_v23 = vpop.f32.mrb[2].mxu0 }
  0xdc   :  { %v133_v22 = vadd.f32 %v761_v14, %v132_v20  ;;  %v832_v24 = vpop.f32.mrb[2].mxu1  ;;  %149 = vst [vmem:[#allocation3 + $0x10] sm:$0xff] %v125_v17  ;;  %v128_v25 = vadd.f32 %v828_v23, %v761_v14  ;;  %v119_v27 = vpop.f32.mrb[3].mxu0 }
  0xdd   :  { %153 = vst [vmem:[#allocation3 + $0x30] sm:$0xff] %v141_v18  ;;  %v144_v26 = vadd.f32 %v832_v24, %v761_v14  ;;  %v135_v28 = vpop.f32.mrb[3].mxu1  ;;  %147 = vst [vmem:[#allocation3] sm:$0xff] %v117_v21  ;;  %v120_v29 = vadd.f32 %v761_v14, %v119_v27 }
  0xde   :  { %151 = vst [vmem:[#allocation3 + $0x20] sm:$0xff] %v133_v22  ;;  %v136_v30 = vadd.f32 %v761_v14, %v135_v28  ;;  %150 = vst [vmem:[#allocation3 + $0x18] sm:$0xff] %v128_v25 }
  0xdf   :  { %154 = vst [vmem:[#allocation3 + $0x38] sm:$0xff] %v144_v26  ;;  %148 = vst [vmem:[#allocation3 + $0x8] sm:$0xff] %v120_v29 }
  0xe0   :  { %152 = vst [vmem:[#allocation3 + $0x28] sm:$0xff] %v136_v30 }
  0xe1 LB: > { %v1045_v33 = vmov 0.0   ;;  %v953_v34 = vld [vmem:[%s1263_s2] sm:$0xff]   ;;  %v166_v35 = vpack.c.bf16 %v1027_v32, %v1027_v32  ;;  %vm1046_vm2 = vmmov 0   ;;  %v954_v36 = vld [vmem:[%s1263_s2 + $0x8] sm:$0xff]   ;;  %s1047_s30 = smov 64   ;;  %vm186_vm3 = vcmask 261120   ;;  %s1031_s0 = sphi %s1161_s0, %s160_s0   ;;  %v1027_v32 = vphi %v1025_v32, %v254_v32   ;;  %v1023_v31 = vphi %v1021_v31, %v248_v31  }
  0xe2   : > { %833 = vmatprep.subr.bf16.mxu0 %v1045_v33  ;;  %837 = vmatprep.mubr.msk.bf16.mxu0 %vm1046_vm2, %v1045_v33  ;;  %s766_s14 = sshll.u32 %s1031_s0, 3  ;;  %s1048_s16 = smov 32  }
  0xe3   : > { %834 = vmatpush3.bf16.msra.mxu0 %v953_v34  ;;  %172 = vrot.lane.b32.xlu0 %v166_v35, %s1047_s30  ;;  %s164_s15 = scalar_lea.vmem [#allocation3], %s766_s14  ;;  %s259_s17 = scalar_lea.vmem [#allocation2], %s766_s14 }
  0xe4   : > { %835 = vmatprep.subr.bf16.mxu0 %v1045_v33  ;;  %s160_s0 = sadd.s32 1, %s1031_s0  }
  0xe5   : > { %p157_p0 = scmp.ge.s32.totalorder %s160_s0, 8  }
  0xe6   :  { %v963_v56 = vld [vmem:[%s1264_s4] sm:$0xff] (%p157_p0)   ;;  %v964_v57 = vld [vmem:[%s1264_s4 + $0x8] sm:$0xff] (%p157_p0)   ;;  %v1033_v23 = vmov (%p157_p0), 0.0   ;;  %v1037_v24 = vmov (%p157_p0), 0.0  }
  0xe7   : > { %836 = vmatpush3.bf16.msra.mxu0 %v954_v36  ;;  %v165_v38 = vld [vmem:[%s164_s15] sm:$0xff]  ;;  %887 = vmatprep.subr.bf16.mxu1 (%p157_p0), %v963_v56 }
  0xe8   :  { %841 = vmatprep.subr.bf16.mxu0 (%p157_p0), %v963_v56  ;;  %889 = vmatpush3.bf16.msra.mxu1 (%p157_p0), %v963_v56  ;;  %v771_v6 = vld [vmem:[%s1266_s6] ss:$0 sm:$0xff] (%p157_p0)  ;;  %s1197_s6 = smov (%p157_p0), 0  }
  0xe9   :  { %888 = vmatprep.subr.bf16.mxu1 (%p157_p0), %v964_v57 }
  0xec   :  { %890 = vmatpush3.bf16.msra.mxu1 (%p157_p0), %v964_v57 }
 0x155   : > { %v173_v37 = vpop.permute.xlu0 %172 }
 0x156   : > { %838 = vmatmul.mubr.msk.bf16.vlgmr.msra.gmra.mrb[0].mxu0 %vm186_vm3, %v173_v37 }
 0x157   :  { %842 = vmatpush3.bf16.msra.mxu0 (%p157_p0), %v963_v56 }
 0x158   :  { %843 = vmatprep.subr.bf16.mxu0 (%p157_p0), %v964_v57 }
 0x15b   :  { %844 = vmatpush3.bf16.msra.mxu0 (%p157_p0), %v964_v57 }
 0x229   : > { %v224_v39 = vpop.f32.mrb[0].mxu0 }
 0x22a   : > { %v230_v40 = vadd.f32 %v224_v39, %v165_v38  ;;  %v839_v41 = vpop.f32.mrb[1].mxu0 }
 0x22b   : > { %v227_v42 = vpop.f32.mrb[2].mxu0 }
 0x22c   : > { %955 = vtanh.f32 %v230_v40  ;;  %v840_v43 = vpop.f32.mrb[3].mxu0  ;;  %v770_v45 = vmul.f32 -1.442695, %v230_v40 }
 0x22e   : > { %957 = vpow2.f32 %v770_v45 }
 0x236   : > { %v956_v44 = vpop.eup %955 }
 0x237   : > { %240 = vrot.lane.b32.xlu0 %v956_v44, %s1048_s16 }
 0x238   : > { %v958_v46 = vpop.eup %957 }
 0x239   : > { %v234_v47 = vadd.f32 1.0, %v958_v46 }
 0x23b   : > { %959 = vrcp.f32 %v234_v47 }
 0x245   : > { %v960_v48 = vpop.eup %959 }
 0x246   : > { %v238_v51 = vmul.f32 %v1023_v31, %v960_v48 }
 0x2a9   : > { %v241_v49 = vpop.permute.xlu0 %240 }
 0x2aa   : > { %v243_v50 = vmul.f32 %v960_v48, %v241_v49 }
 0x2ac   : > { %245 = vrot.lane.b32.xlu1 %v243_v50, %s1048_s16 }
 0x31e   : > { %v246_v52 = vpop.permute.xlu1 %245 }
 0x31f   : > { %v248_v31 = vadd.f32 %v246_v52, %v238_v51  }
 0x321   : > { %961 = vtanh.f32 %v248_v31 }
 0x32b   : > { %v962_v53 = vpop.eup %961 }
 0x32c   : > { %251 = vrot.lane.b32.xlu1 %v962_v53, %s1048_s16 }
 0x39e   : > { %v252_v54 = vpop.permute.xlu1 %251 }
 0x39f   : > { %v254_v32 = vmul.f32 %v960_v48, %v252_v54  }
 0x3a1   : > { %256 = vrot.lane.b32.xlu0 %v254_v32, %s1047_s30 }
 0x40e   :  { %159 = sbr.rel (!%p157_p0) target bundleno = 225 (0xe1), region = 89 }
 0x413   : > { %v257_v55 = vpop.permute.xlu0 %256 }
 0x414   : > { %260 = vst.msk [vmem:[%s259_s17] sm:$0xff] %vm186_vm3, %v257_v55 }
 0x41b   :  { %v261_v58 = vld [vmem:[#allocation2] sm:$0xff]  ;;  %v262_v59 = vld [vmem:[#allocation2 + $0x8] sm:$0xff]  ;;  %v263_v63 = vld [vmem:[#allocation2 + $0x10] sm:$0xff] }
 0x41c   :  { %v265_v60 = vld [vmem:[#allocation2 + $0x20] sm:$0xff]  ;;  %v269_v61 = vpack.c.bf16 %v262_v59, %v261_v58  ;;  %v266_v62 = vld [vmem:[#allocation2 + $0x28] sm:$0xff]  ;;  %v264_v0 = vld [vmem:[#allocation2 + $0x18] sm:$0xff] }
 0x41d   :  { %v271_v1 = vpack.c.bf16 %v266_v62, %v265_v60  ;;  %v267_v2 = vld [vmem:[#allocation2 + $0x30] sm:$0xff]  ;;  %v268_v3 = vld [vmem:[#allocation2 + $0x38] sm:$0xff]  ;;  %v270_v4 = vpack.c.bf16 %v264_v0, %v263_v63 }
 0x41e   :  { %845 = vmatprep.mubr.msk.bf16.mxu0 %vm186_vm3, %v269_v61  ;;  %v272_v5 = vpack.c.bf16 %v268_v3, %v267_v2 }
 0x41f   :  { %849 = vmatprep.mubr.msk.bf16.mxu1 %vm186_vm3, %v271_v1  ;;  %846 = vmatmul.mubr.msk.bf16.vlgmr.msra.gmra.mrb[0].mxu0 %vm186_vm3, %v270_v4 }
 0x420   :  { %850 = vmatmul.mubr.msk.bf16.vlgmr.msra.gmra.mrb[0].mxu1 %vm186_vm3, %v272_v5 }
 0x4f2   :  { %v847_v7 = vpop.f32.mrb[0].mxu0 }
 0x4f3   :  { %v851_v8 = vpop.f32.mrb[0].mxu1  ;;  %v352_v9 = vadd.f32 %v847_v7, %v771_v6  ;;  %v343_v11 = vpop.f32.mrb[1].mxu0 }
 0x4f4   :  { %v368_v10 = vadd.f32 %v851_v8, %v771_v6  ;;  %v359_v12 = vpop.f32.mrb[1].mxu1  ;;  %v344_v13 = vadd.f32 %v771_v6, %v343_v11  ;;  %v848_v15 = vpop.f32.mrb[2].mxu0 }
 0x4f5   :  { %v360_v14 = vadd.f32 %v771_v6, %v359_v12  ;;  %v852_v16 = vpop.f32.mrb[2].mxu1  ;;  %376 = vst [vmem:[#allocation3 + $0x10] sm:$0xff] %v352_v9  ;;  %v355_v17 = vadd.f32 %v848_v15, %v771_v6  ;;  %v346_v19 = vpop.f32.mrb[3].mxu0 }
 0x4f6   :  { %380 = vst [vmem:[#allocation3 + $0x30] sm:$0xff] %v368_v10  ;;  %v371_v18 = vadd.f32 %v852_v16, %v771_v6  ;;  %v362_v20 = vpop.f32.mrb[3].mxu1  ;;  %374 = vst [vmem:[#allocation3] sm:$0xff] %v344_v13  ;;  %v347_v21 = vadd.f32 %v771_v6, %v346_v19 }
 0x4f7   :  { %378 = vst [vmem:[#allocation3 + $0x20] sm:$0xff] %v360_v14  ;;  %v363_v22 = vadd.f32 %v771_v6, %v362_v20  ;;  %377 = vst [vmem:[#allocation3 + $0x18] sm:$0xff] %v355_v17 }
 0x4f8   :  { %381 = vst [vmem:[#allocation3 + $0x38] sm:$0xff] %v371_v18  ;;  %375 = vst [vmem:[#allocation3 + $0x8] sm:$0xff] %v347_v21 }
 0x4f9   :  { %379 = vst [vmem:[#allocation3 + $0x28] sm:$0xff] %v363_v22 }
 0x4fa LB: > { %v1049_v25 = vmov 0.0   ;;  %v965_v26 = vld [vmem:[%s1265_s5] sm:$0xff]   ;;  %v393_v27 = vpack.c.bf16 %v1039_v24, %v1039_v24  ;;  %vm1050_vm4 = vmmov 0   ;;  %v966_v28 = vld [vmem:[%s1265_s5 + $0x8] sm:$0xff]   ;;  %s1051_s25 = smov 64   ;;  %s778_s26 = sshll.u32 %s1043_s6, 3  ;;  %s1043_s6 = sphi %s1197_s6, %s387_s6   ;;  %v1039_v24 = vphi %v1037_v24, %v1038_v24   ;;  %v1035_v23 = vphi %v1033_v23, %v474_v23  }
 0x4fb   : > { %853 = vmatprep.subr.bf16.mxu0 %v1049_v25  ;;  %857 = vmatprep.mubr.msk.bf16.mxu0 %vm1050_vm4, %v1049_v25  ;;  %s391_s0 = scalar_lea.vmem [#allocation3], %s778_s26  ;;  %s1052_s3 = smov 32  }
 0x4fc   : > { %854 = vmatpush3.bf16.msra.mxu0 %v965_v26  ;;  %399 = vrot.lane.b32.xlu0 %v393_v27, %s1051_s25  ;;  %s387_s6 = sadd.s32 1, %s1043_s6  }
 0x4fd   : > { %855 = vmatprep.subr.bf16.mxu0 %v1049_v25  ;;  %p384_p1 = scmp.ge.s32.totalorder %s387_s6, 8  }
 0x4fe   :  { %v1053_v49 = vmov (%p384_p1), 0.0   ;;  %v975_v50 = vld [vmem:[%s1267_s7] sm:$0xff] (%p384_p1)   ;;  %s1054_s29 = smov (%p384_p1), 64   ;;  %v976_v51 = vld [vmem:[%s1267_s7 + $0x8] sm:$0xff] (%p384_p1)   ;;  %vm1055_vm5 = vmmov (%p384_p1), 0   ;;  %s1056_s7 = smov (%p384_p1), 32  }
 0x4ff   :  { %869 = vmatprep.subr.bf16.mxu1 (%p384_p1), %v1053_v49  ;;  %873 = vmatprep.mubr.msk.bf16.mxu1 (%p384_p1), %vm1055_vm5, %v1053_v49  ;;  %v783_v53 = vld [vmem:[%s1268_s8] ss:$0 sm:$0xff] (%p384_p1)  ;;  %v978_v3 = vld [vmem:[%s1269_s9 + $0x8] sm:$0xff] (%p384_p1)   ;;  %vm727_vm6 = vcmask (%p384_p1), 39936  }
 0x500   : > { %856 = vmatpush3.bf16.msra.mxu0 %v966_v28  ;;  %v392_v30 = vld [vmem:[%s391_s0] sm:$0xff] }
 0x501   :  { %861 = vmatprep.subr.bf16.mxu0 (%p384_p1), %v1053_v49  ;;  %v977_v2 = vld [vmem:[%s1269_s9] sm:$0xff] (%p384_p1)  }
 0x502   :  { %870 = vmatpush3.bf16.msra.mxu1 (%p384_p1), %v977_v2  ;;  %v788_v9 = vld [vmem:[%s1270_s10] ss:$0 sm:$0xff] (%p384_p1) }
 0x503   :  { %871 = vmatprep.subr.bf16.mxu1 (%p384_p1), %v1053_v49  ;;  %v979_v22 = vld [vmem:[%s1271_s11] sm:$0xff] (%p384_p1)  }
 0x506   :  { %872 = vmatpush3.bf16.msra.mxu1 (%p384_p1), %v978_v3 }
 0x56e   : > { %v400_v29 = vpop.permute.xlu0 %399 }
 0x56f   : > { %858 = vmatmul.mubr.msk.bf16.vlgmr.msra.gmra.mrb[0].mxu0 %vm186_vm3, %v400_v29  ;;  %v793_v29 = vld [vmem:[%s1272_s12] ss:$0 sm:$0xff] (%p384_p1) }
 0x570   :  { %865 = vmatprep.mubr.msk.bf16.mxu0 (%p384_p1), %vm1055_vm5, %v1053_v49  ;;  %862 = vmatpush3.bf16.msra.mxu0 (%p384_p1), %v975_v50 }
 0x571   :  { %863 = vmatprep.subr.bf16.mxu0 (%p384_p1), %v1053_v49 }
 0x574   :  { %864 = vmatpush3.bf16.msra.mxu0 (%p384_p1), %v976_v51 }
 0x575   :  { %877 = vmatprep.subr.bf16.mxu0 (%p384_p1), %v1053_v49 }
 0x642   : > { %v450_v31 = vpop.f32.mrb[0].mxu0 }
 0x643   : > { %v456_v32 = vadd.f32 %v450_v31, %v392_v30  ;;  %v859_v33 = vpop.f32.mrb[1].mxu0 }
 0x644   : > { %v453_v34 = vpop.f32.mrb[2].mxu0 }
 0x645   : > { %967 = vtanh.f32 %v456_v32  ;;  %v860_v35 = vpop.f32.mrb[3].mxu0  ;;  %v782_v37 = vmul.f32 -1.442695, %v456_v32 }
 0x647   : > { %969 = vpow2.f32 %v782_v37 }
 0x64f   : > { %v968_v36 = vpop.eup %967 }
 0x650   : > { %466 = vrot.lane.b32.xlu0 %v968_v36, %s1052_s3 }
 0x651   : > { %v970_v38 = vpop.eup %969 }
 0x652   : > { %v460_v39 = vadd.f32 1.0, %v970_v38 }
 0x654   : > { %971 = vrcp.f32 %v460_v39 }
 0x65e   : > { %v972_v40 = vpop.eup %971 }
 0x65f   : > { %v464_v43 = vmul.f32 %v1035_v23, %v972_v40 }
 0x6c2   : > { %v467_v41 = vpop.permute.xlu0 %466 }
 0x6c3   : > { %v469_v42 = vmul.f32 %v972_v40, %v467_v41 }
 0x6c5   : > { %471 = vrot.lane.b32.xlu1 %v469_v42, %s1052_s3 }
 0x737   : > { %v472_v44 = vpop.permute.xlu1 %471 }
 0x738   : > { %v474_v23 = vadd.f32 %v472_v44, %v464_v43  }
 0x73a   : > { %973 = vtanh.f32 %v474_v23  ;;  %v980_v23 = vld [vmem:[%s1271_s11 + $0x8] sm:$0xff] (%p384_p1)  }
 0x744   : > { %v974_v45 = vpop.eup %973 }
 0x745   : > { %477 = vrot.lane.b32.xlu1 %v974_v45, %s1052_s3 }
 0x7b4   :  { %386 = sbr.rel (!%p384_p1) target bundleno = 1274 (0x4fa), region = 100 }
 0x7b7   : > { %v478_v46 = vpop.permute.xlu1 %477 }
 0x7b8   : > { %v480_v47 = vmul.f32 %v972_v40, %v478_v46  }
 0x7ba   : > { %v1038_v24 = vmov %v480_v47   ;;  %v481_v48 = vpack.c.bf16 (%p384_p1), %v480_v47, %v480_v47 }
 0x7bc   :  { %494 = vrot.lane.b32.xlu0 %v481_v48, %s1054_s29 }
 0x82e   :  { %v495_v52 = vpop.permute.xlu0 %494 }
 0x82f   :  { %866 = vmatmul.mubr.msk.bf16.vlgmr.msra.gmra.mrb[0].mxu0 %vm186_vm3, %v495_v52 }
 0x830   :  { %881 = vmatprep.mubr.msk.bf16.mxu0 %vm1055_vm5, %v1053_v49  ;;  %878 = vmatpush3.bf16.msra.mxu0 %v979_v22 }
 0x831   :  { %879 = vmatprep.subr.bf16.mxu0 %v1053_v49 }
 0x834   :  { %880 = vmatpush3.bf16.msra.mxu0 %v980_v23 }
 0x902   :  { %v545_v54 = vpop.f32.mrb[0].mxu0 }
 0x903   :  { %v546_v55 = vadd.f32 %v783_v53, %v545_v54  ;;  %v867_v56 = vpop.f32.mrb[1].mxu0 }
 0x904   :  { %v548_v57 = vpop.f32.mrb[2].mxu0 }
 0x905   :  { %981 = vtanh.f32 %v546_v55  ;;  %v868_v58 = vpop.f32.mrb[3].mxu0  ;;  %v787_v60 = vmul.f32 -1.442695, %v546_v55 }
 0x907   :  { %983 = vpow2.f32 %v787_v60 }
 0x90f   :  { %v982_v59 = vpop.eup %981 }
 0x910   :  { %559 = vrot.lane.b32.xlu0 %v982_v59, %s1056_s7 }
 0x911   :  { %v984_v61 = vpop.eup %983 }
 0x912   :  { %v554_v62 = vadd.f32 1.0, %v984_v61 }
 0x914   :  { %985 = vrcp.f32 %v554_v62 }
 0x91e   :  { %v986_v63 = vpop.eup %985 }
 0x982   :  { %v560_v0 = vpop.permute.xlu0 %559 }
 0x983   :  { %v562_v1 = vmul.f32 %v986_v63, %v560_v0 }
 0x985   :  { %987 = vtanh.f32 %v562_v1 }
 0x98f   :  { %v988_v4 = vpop.eup %987 }
 0x990   :  { %565 = vrot.lane.b32.xlu1 %v988_v4, %s1054_s29 }
 0xa02   :  { %v566_v5 = vpop.permute.xlu1 %565 }
 0xa03   :  { %v568_v6 = vmul.f32 %v986_v63, %v566_v5 }
 0xa05   :  { %v569_v7 = vpack.c.bf16 %v568_v6, %v568_v6 }
 0xa07   :  { %582 = vrot.lane.b32.xlu1 %v569_v7, %s1054_s29 }
 0xa79   :  { %v583_v8 = vpop.permute.xlu1 %582 }
 0xa7a   :  { %874 = vmatmul.mubr.msk.bf16.vlgmr.msra.gmra.mrb[0].mxu1 %vm186_vm3, %v583_v8 }
 0xb4d   :  { %v633_v10 = vpop.f32.mrb[0].mxu1 }
 0xb4e   :  { %v634_v11 = vadd.f32 %v788_v9, %v633_v10  ;;  %v875_v12 = vpop.f32.mrb[1].mxu1 }
 0xb4f   :  { %v636_v13 = vpop.f32.mrb[2].mxu1 }
 0xb50   :  { %989 = vtanh.f32 %v634_v11  ;;  %v876_v14 = vpop.f32.mrb[3].mxu1  ;;  %v792_v16 = vmul.f32 -1.442695, %v634_v11 }
 0xb52   :  { %991 = vpow2.f32 %v792_v16 }
 0xb5a   :  { %v990_v15 = vpop.eup %989 }
 0xb5b   :  { %647 = vrot.lane.b32.xlu0 %v990_v15, %s1056_s7 }
 0xb5c   :  { %v992_v17 = vpop.eup %991 }
 0xb5d   :  { %v642_v18 = vadd.f32 1.0, %v992_v17 }
 0xb5f   :  { %993 = vrcp.f32 %v642_v18 }
 0xb69   :  { %v994_v19 = vpop.eup %993 }
 0xbcd   :  { %v648_v20 = vpop.permute.xlu0 %647 }
 0xbce   :  { %v650_v21 = vmul.f32 %v994_v19, %v648_v20 }
 0xbd0   :  { %995 = vtanh.f32 %v650_v21 }
 0xbda   :  { %v996_v24 = vpop.eup %995 }
 0xbdb   :  { %653 = vrot.lane.b32.xlu1 %v996_v24, %s1054_s29 }
 0xc4d   :  { %v654_v25 = vpop.permute.xlu1 %653 }
 0xc4e   :  { %v656_v26 = vmul.f32 %v994_v19, %v654_v25 }
 0xc50   :  { %v657_v27 = vpack.c.bf16 %v656_v26, %v656_v26 }
 0xc52   :  { %670 = vrot.lane.b32.xlu0 %v657_v27, %s1054_s29 }
 0xcc4   :  { %v671_v28 = vpop.permute.xlu0 %670 }
 0xcc5   :  { %882 = vmatmul.mubr.msk.bf16.vlgmr.msra.gmra.mrb[4].mxu0 %vm186_vm3, %v671_v28 }
 0xd98   :  { %v721_v30 = vpop.f32.mrb[4].mxu0 }
 0xd99   :  { %v722_v31 = vadd.f32 %v793_v29, %v721_v30  ;;  %v883_v32 = vpop.f32.mrb[5].mxu0 }
 0xd9a   :  { %v724_v33 = vpop.f32.mrb[6].mxu0 }
 0xd9b   :  { %728 = vst.msk [vmem:[%s1273_s13] sm:$0xff] %vm727_vm6, %v722_v31  ;;  %v884_v34 = vpop.f32.mrb[7].mxu0 }

</bundles_post_ra>
